<compile_context>
chip_gen: v5e
topology: v5e:2x2
jax: 0.10.0
libtpu: 0.0.40
codegen_flags: <defaults>
</compile_context>

<pallas_src>
import jax
import jax.numpy as jnp
from jax import lax
from jax.experimental import pallas as pl
from jax.experimental.pallas import tpu as pltpu


def _round_up(x, m):
    return ((x + m - 1) // m) * m


def _pick_tile(dim, candidates):
    """Largest candidate that evenly divides `dim`, else the full dim."""
    for c in candidates:
        if c <= dim and dim % c == 0:
            return c
    return dim


def mlm_forward(hidden_states_last, weight, bias, *,
                compute_dtype=jnp.bfloat16, out_dtype=None):
    """MLM head forward.

    hidden_states_last: (B, S, H)   -- hidden_states[-1]
    weight:             (V, H)      -- PyTorch nn.Linear weight layout (no transpose!)
    bias:               (V,)
    returns:            (B, S-1, V) == Linear(hidden[:, 1:, :])
    """
    B, S, H = hidden_states_last.shape
    V = weight.shape[0]
    assert S >= 2, "need at least 2 tokens to drop the first one"
    if out_dtype is None:
        out_dtype = hidden_states_last.dtype

    # ---- wrapper-side preprocessing ---------------------------------------
    # Drop token 0 and flatten tokens so M = B*(S-1) feeds the MXU directly.
    # Cast to bf16 here (one pass over B*S*H / V*H bytes) so the kernel's DMA
    # and VMEM tiles are already in compute dtype.
    M = B * (S - 1)
    x = hidden_states_last[:, 1:, :].reshape(M, H).astype(compute_dtype)
    w = weight.astype(compute_dtype)               # native (V, H), no transpose
    b = bias.astype(jnp.float32)

    # ---- tile selection ----------------------------------------------------
    # K (hidden) tile: keep the full H per tile when small enough so the grid
    # has no reduction axis (weight streamed exactly once, no f32 scratch).
    if H <= 2048:
        tk = H
    else:
        tk = _pick_tile(H, (2048, 1024, 512, 256, 128))
    H_pad = _round_up(H, tk)
    n_k = H_pad // tk

    # N (vocab) tile: as large as possible while one bf16 weight tile stays
    # <= ~8 MiB so double buffering fits every generation's VMEM budget.
    max_w_elems = 4 * 1024 * 1024
    tn = 128
    for cand in (2048, 1024, 512, 256, 128):
        if cand * tk <= max_w_elems:
            tn = cand
            break
    tn = min(tn, _round_up(V, 128))
    V_pad = _round_up(V, tn)
    n_v = V_pad // tn

    # M (token) tile: bounded so accumulator / out tile is independent of S.
    M8 = _round_up(M, 8)
    if M8 <= 512:
        tm = M8
    else:
        tm = min((512, 256, 128), key=lambda c: (_round_up(M, c), -c))
    M_pad = _round_up(M, tm)
    n_m = M_pad // tm

    # Zero-pad operands to tile multiples (zeros along H contribute nothing;
    # padded M rows / V columns are sliced off after the call).
    if M_pad != M or H_pad != H:
        x = jnp.pad(x, ((0, M_pad - M), (0, H_pad - H)))
    if V_pad != V or H_pad != H:
        w = jnp.pad(w, ((0, V_pad - V), (0, H_pad - H)))
    if V_pad != V:
        b = jnp.pad(b, (0, V_pad - V))
    b2d = b.reshape(1, V_pad)

    dn = (((1,), (1,)), ((), ()))   # contract H: dim 1 of x with dim 1 of w

    # ---- kernels / specs ----------------------------------------------------
    if n_k == 1:
        # Fast path: no K reduction -> no scratch, single write per tile.
        def kernel(x_ref, w_ref, b_ref, o_ref):
            acc = lax.dot_general(x_ref[...], w_ref[...],
                                  dimension_numbers=dn,
                                  preferred_element_type=jnp.float32)
            o_ref[...] = (acc + b_ref[...]).astype(o_ref.dtype)

        grid = (n_v, n_m)
        in_specs = [
            pl.BlockSpec((tm, tk), lambda j, i: (i, 0)),
            pl.BlockSpec((tn, tk), lambda j, i: (j, 0)),   # resident across m loop
            pl.BlockSpec((1, tn), lambda j, i: (0, j)),
        ]
        out_spec = pl.BlockSpec((tm, tn), lambda j, i: (i, j))
        scratch = []
        dim_sem = ("parallel", "parallel")
    else:
        def kernel(x_ref, w_ref, b_ref, o_ref, acc_ref):
            k = pl.program_id(2)

            @pl.when(k == 0)
            def _init():
                acc_ref[...] = jnp.zeros_like(acc_ref)

            acc_ref[...] += lax.dot_general(
                x_ref[...], w_ref[...], dimension_numbers=dn,
                preferred_element_type=jnp.float32)

            @pl.when(k == pl.num_programs(2) - 1)
            def _finalize():
                o_ref[...] = (acc_ref[...] + b_ref[...]).astype(o_ref.dtype)

        grid = (n_v, n_m, n_k)
        in_specs = [
            pl.BlockSpec((tm, tk), lambda j, i, k: (i, k)),
            pl.BlockSpec((tn, tk), lambda j, i, k: (j, k)),
            pl.BlockSpec((1, tn), lambda j, i, k: (0, j)),
        ]
        out_spec = pl.BlockSpec((tm, tn), lambda j, i, k: (i, j))
        scratch = [pltpu.VMEM((tm, tn), jnp.float32)]
        dim_sem = ("parallel", "parallel", "arbitrary")

    # ---- VMEM budget & cost estimate ---------------------------------------
    csize = jnp.dtype(compute_dtype).itemsize
    osize = jnp.dtype(out_dtype).itemsize
    est = (2 * (tm * tk + tn * tk) * csize      # double-buffered x + w
           + 2 * tm * tn * osize                # double-buffered out
           + 2 * tn * 4                         # bias
           + (tm * tn * 4 if n_k > 1 else 0))   # f32 accumulator
    vmem_limit = int(min(64 * 1024 * 1024, max(32 * 1024 * 1024, 2 * est)))

    x_bytes = n_v * M_pad * H_pad * csize                     # x re-read per V tile
    w_bytes = (n_m if n_k > 1 else 1) * V_pad * H_pad * csize
    cost = pl.CostEstimate(
        flops=2 * M_pad * H_pad * V_pad,
        transcendentals=0,
        bytes_accessed=int(x_bytes + w_bytes + V_pad * 4 + M_pad * V_pad * osize),
    )

    out = pl.pallas_call(
        kernel,
        out_shape=jax.ShapeDtypeStruct((M_pad, V_pad), out_dtype),
        grid_spec=pltpu.PrefetchScalarGridSpec(
            num_scalar_prefetch=0,
            grid=grid,
            in_specs=in_specs,
            out_specs=out_spec,
            scratch_shapes=scratch,
        ),
        compiler_params=pltpu.CompilerParams(
            dimension_semantics=dim_sem,
            vmem_limit_bytes=vmem_limit,
        ),
        cost_estimate=cost,
    )(x, w, b2d)

    # Drop padded rows / vocab columns and restore (B, S-1, V).
    return out[:M, :V].reshape(B, S - 1, V)


if __name__ == "__main__":
    # Small shapes consistent with the module: batch=2, seq=8, hidden=32,
    # vocab=128 (len(e2w) -- synthetic vocab size).
    B, S, H = 2, 8, 32
    V = 128

    key = jax.random.PRNGKey(0)
    k_h, k_w, k_b = jax.random.split(key, 3)

    # "hidden_states[-1]" input.
    hidden = jax.random.normal(k_h, (B, S, H), dtype=jnp.float32)

    # Deterministic Linear(H, V) params, PyTorch-style uniform(-1/sqrt(H), 1/sqrt(H)).
    bound = 1.0 / (H ** 0.5)
    weight = jax.random.uniform(k_w, (V, H), minval=-bound, maxval=bound,
                                dtype=jnp.float32)
    bias = jax.random.uniform(k_b, (V,), minval=-bound, maxval=bound,
                              dtype=jnp.float32)

    out = mlm_forward(hidden, weight, bias)
    out = jax.block_until_ready(out)
    assert out.shape == (B, S - 1, V)

    # Reference in plain JAX: bf16-rounded inputs, f32 accumulation (matches
    # the kernel's compute dtype), against the module semantics proj(y[:, 1:, :]).
    x_bf = hidden[:, 1:, :].astype(jnp.bfloat16).astype(jnp.float32)
    w_bf = weight.astype(jnp.bfloat16).astype(jnp.float32)
    ref = jnp.einsum("bsh,vh->bsv", x_bf, w_bf) + bias
    max_err = float(jnp.max(jnp.abs(out - ref)))
    assert jnp.allclose(out, ref, atol=1e-2, rtol=1e-2), max_err

    print("KERNEL_OK")
</pallas_src>

<mosaic_0001>
module attributes {stable_mosaic.version = 11 : i64} {
  func.func @kernel(%arg0: i32, %arg1: i32, %arg2: memref<16x32xbf16, #tpu.memory_space<vmem>>, %arg3: memref<128x32xbf16, #tpu.memory_space<vmem>>, %arg4: memref<1x128xf32, #tpu.memory_space<vmem>>, %arg5: memref<16x128xf32, #tpu.memory_space<vmem>>) attributes {dimension_semantics = [#tpu.dimension_semantics<parallel>, #tpu.dimension_semantics<parallel>], iteration_bounds = array<i64: 1, 1>, scalar_prefetch = 0 : i64, scratch_operands = 0 : i64, tpu.core_type = #tpu.core_type<tc>, window_params = [{transform_indices = @transform_0, window_bounds = array<i64: 16, 32>}, {transform_indices = @transform_1, window_bounds = array<i64: 128, 32>}, {transform_indices = @transform_2, window_bounds = array<i64: 1, 128>}, {transform_indices = @transform_3, window_bounds = array<i64: 16, 128>}]} {
    %c0 = arith.constant 0 : index
    %c0_0 = arith.constant 0 : index
    %0 = vector.load %arg2[%c0, %c0_0] : memref<16x32xbf16, #tpu.memory_space<vmem>>, vector<16x32xbf16>
    %c0_1 = arith.constant 0 : index
    %c0_2 = arith.constant 0 : index
    %1 = vector.load %arg3[%c0_1, %c0_2] : memref<128x32xbf16, #tpu.memory_space<vmem>>, vector<128x32xbf16>
    %cst = arith.constant dense<0.000000e+00> : vector<16x128xf32>
    %2 = tpu.matmul %0, %1, %cst {dimension_numbers = #tpu.dot_dimension_numbers<[1], [1], [0], [0], [0, 0, 1, 0], [], []>} : vector<16x32xbf16>, vector<128x32xbf16>, vector<16x128xf32> -> vector<16x128xf32>
    %c0_3 = arith.constant 0 : index
    %c0_4 = arith.constant 0 : index
    %3 = vector.load %arg4[%c0_3, %c0_4] : memref<1x128xf32, #tpu.memory_space<vmem>>, vector<1x128xf32>
    %4 = vector.broadcast %3 : vector<1x128xf32> to vector<16x128xf32>
    %5 = arith.addf %2, %4 : vector<16x128xf32>
    %c0_5 = arith.constant 0 : index
    %c0_6 = arith.constant 0 : index
    %6 = vector.load %arg5[%c0_5, %c0_6] : memref<16x128xf32, #tpu.memory_space<vmem>>, vector<16x128xf32>
    tpu.vector_store %arg5[%c0_5, %c0_6], %5 {strides = array<i32>} : memref<16x128xf32, #tpu.memory_space<vmem>>, vector<16x128xf32>,
    return
  }
  func.func @transform_0(%arg0: i32, %arg1: i32) -> (i32, i32) {
    %c0_i32 = arith.constant 0 : i32
    %c0_i32_0 = arith.constant 0 : i32
    return %arg1, %c0_i32 : i32, i32
  }
  func.func @transform_1(%arg0: i32, %arg1: i32) -> (i32, i32) {
    %c0_i32 = arith.constant 0 : i32
    %c0_i32_0 = arith.constant 0 : i32
    return %arg0, %c0_i32 : i32, i32
  }
  func.func @transform_2(%arg0: i32, %arg1: i32) -> (i32, i32) {
    %c0_i32 = arith.constant 0 : i32
    %c0_i32_0 = arith.constant 0 : i32
    return %c0_i32, %arg0 : i32, i32
  }
  func.func @transform_3(%arg0: i32, %arg1: i32) -> (i32, i32) {
    %c0_i32 = arith.constant 0 : i32
    return %arg1, %arg0 : i32, i32
  }
}

</mosaic_0001>

<bundles_post_ra>
// kernel: tpu_custom_call.1
= control target key start
LH: loop header
LB: loop body
LE: loop exit
PB: predicated region body
PF: predicated region fallthrough
CT: control target
= control target key end

     0   :  { %vm82_vm0 = vcmask 261120   ;;  %s285_s0 = inlined_call_operand.vmem [shape: bf16[16,32], index: 0, kind: input, shape index: {}]   ;;  %s286_s1 = inlined_call_operand.vmem [shape: bf16[128,32], index: 1, kind: input, shape index: {}]   ;;  %s287_s2 = inlined_call_operand.vmem [shape: f32[1,128], index: 2, kind: input, shape index: {}]   ;;  %s288_s3 = inlined_call_operand.hbm [shape: f32[16,128], index: 3, kind: output, shape index: {}]  }
   0x1   :  { %v189_v0 = vld [vmem:[%s286_s1 + $0x38] sm:$0xff] }
   0x2   :  { %v108_v1 = vsel %vm82_vm0, %v189_v0, 0 }
   0x3   :  { %8 = vsyncpa [#allocation3], 0  ;;  %110 = vmatpush.bf16.xpose.msra.mxu0 %v108_v1  ;;  %v188_v2 = vld [vmem:[%s286_s1 + $0x30] sm:$0xff]  ;;  %v187_v4 = vld [vmem:[%s286_s1 + $0x28] sm:$0xff]  ;;  %s220_s5 = smov [#allocation2]   ;;  %s132_s8 = sshll.u32 %s288_s3, 4  ;;  %s133_s8 = int_to_ptr.hbm [resolvable:$true] %s132_s8 }
   0x4   :  { %v105_v3 = vsel %vm82_vm0, %v188_v2, 0  ;;  %v102_v5 = vsel %vm82_vm0, %v187_v4, 0  ;;  %v186_v6 = vld [vmem:[%s286_s1 + $0x20] sm:$0xff]  ;;  %v185_v8 = vld [vmem:[%s286_s1 + $0x18] sm:$0xff]  ;;  %v184_v10 = vld [vmem:[%s286_s1 + $0x10] sm:$0xff]  ;;  %s130_s6 = sshll.u32 %s220_s5, 4  ;;  %s131_s6 = int_to_ptr.vmem [resolvable:$true] %s130_s6 }
   0x5   :  { %v99_v7 = vsel %vm82_vm0, %v186_v6, 0  ;;  %v96_v9 = vsel %vm82_vm0, %v185_v8, 0  ;;  %v93_v11 = vsel %vm82_vm0, %v184_v10, 0  ;;  %v183_v12 = vld [vmem:[%s286_s1 + $0x8] sm:$0xff]  ;;  %v182_v14 = vld [vmem:[%s286_s1] sm:$0xff]  ;;  %s222_s9 = smov 8  }
   0x6   :  { %v90_v13 = vsel %vm82_vm0, %v183_v12, 0  ;;  %v87_v15 = vsel %vm82_vm0, %v182_v14, 0  ;;  %v181_v16 = vld [vmem:[%s285_s0] sm:$0xff]  ;;  %s221_s0 = smov 128  }
   0x7   :  { %v193_v17 = vld [vmem:[%s287_s2] ss:$0 sm:$0xff] }
   0xb   :  { %111 = vmatpush.bf16.xpose.msra.mxu0 %v105_v3 }
  0x13   :  { %112 = vmatpush.bf16.xpose.msra.mxu0 %v102_v5 }
  0x1b   :  { %113 = vmatpush.bf16.xpose.msra.mxu0 %v99_v7 }
  0x23   :  { %114 = vmatpush.bf16.xpose.msra.mxu0 %v96_v9 }
  0x2b   :  { %115 = vmatpush.bf16.xpose.msra.mxu0 %v93_v11 }
  0x33   :  { %116 = vmatpush.bf16.xpose.msra.mxu0 %v90_v13 }
  0x3b   :  { %117 = vmatpush.bf16.xpose.msra.mxu0 %v87_v15 }
  0x42   :  { %180 = vmatmul.msk.bf16.vlgmr.msra.gmra.mxu0 %vm82_vm0, %v181_v16 }
  0xbf   :  { %v119_v18 = vpop.f32.mrf.mxu0 }
  0xc0   :  { %v120_v19 = vadd.f32 %v193_v17, %v119_v18 }
  0xc2   :  { %124 = vst [vmem:[#allocation2] sm:$0xff] %v120_v19 }
  0xc7   :  { %v121_v20 = vpop.f32.mrf.mxu0 }
  0xc8   :  { %v122_v21 = vadd.f32 %v193_v17, %v121_v20 }
  0xca   :  { %125 = vst [vmem:[#allocation2 + $0x8] sm:$0xff] %v122_v21 }
  0xcb   :  { %138 = dma.vmem_to_hbm [thread:$0]  %s131_s6, 256, %s133_s8, [#allocation3], %s221_s0, %s221_s0, %s222_s9  }
  0xcc   :  { %218 = dma.done.wait [#allocation3], 256  }
  0xcd   :  { %219 = vsyncadd [#allocation3], 4294967040 }
  0xce   :  { %143 = vsyncpa [#allocation3], 1 }

</bundles_post_ra>
